<compile_context>
chip_gen: v6e
topology: v6e:2x2x1
jax: 0.10.0
libtpu: 0.0.40
codegen_flags: <defaults>
</compile_context>

<pallas_src>
import functools

import numpy as np
import jax
import jax.numpy as jnp
from jax.experimental import pallas as pl
from jax.experimental.pallas import tpu as pltpu


def _round_up(x, m):
    return ((x + m - 1) // m) * m


def conv_transp_block(x_nchw, w_pt, b, *, stride,
                      compute_dtype=jnp.bfloat16, batch_tile=None):
    """Forward of ConvTranspBlock: ConvTranspose2d(stride) + LeakyReLU(0.01).

    x_nchw : (N, Cin, H, W)      (PyTorch layout, used as-is)
    w_pt   : (Cin, Cout, K, K)   (PyTorch ConvTranspose2d weight layout)
    b      : (Cout,)
    compute_dtype : MXU operand dtype (bf16 for v6e/v7x peak; accumulate is f32)
    batch_tile    : batch elements per grid step. None = whole batch in one step
                    (right choice on single-TC v5e/v6e). On v7x, split in two
                    only once each step has a few microseconds of matmul work.
    returns: (N, Cout, Hout, Wout) with Hout = (H-1)*stride + K
    """
    N, Cin, H, W = x_nchw.shape
    _, Cout, K, _ = w_pt.shape
    s = int(stride)
    Km = -(-K // s)                       # taps per output residue = ceil(K/s)
    P = Km - 1                            # spatial zero-pad (input pixels) per side
    Hp, Wp = H + 2 * P, W + 2 * P
    Qh, Qw = H + Km - 1, W + Km - 1       # uniform per-residue output extent
    Hout, Wout = (H - 1) * s + K, (W - 1) * s + K
    R = s * s * Cout                      # output rows: (residue_h, residue_w, Cout)

    # ---- sublane / lane padding (aligned stores, lane-dense output) ----
    itemsize = jnp.dtype(compute_dtype).itemsize
    sub = (8 * 4) // itemsize             # sublane store granularity: 8 (f32) / 16 (bf16)
    Cin_pad = _round_up(Cin + 1, sub)     # +1 slot: an all-ones "bias channel"
    Ctot = Km * Km * Cin_pad              # contraction depth, sublane-aligned per tap
    L = Qh * Wp                           # valid flat output columns per batch element
    Lpad = _round_up(L, 128)              # lane-dense per-batch column extent
    max_off = P * Wp + P                  # largest flat tap-window shift
    Lin_pad = _round_up(max_off + Lpad, 128)
    # VMEM refs have no runtime bounds check: every in-kernel window read is
    # x[:, off : off+Lpad] with off <= max_off, so Lin_pad >= max_off + Lpad keeps
    # all reads strictly inside the x block.
    assert max_off + Lpad <= Lin_pad

    NB = N if batch_tile is None else int(batch_tile)
    assert N % NB == 0, "batch_tile must divide N"
    T = N // NB

    # ---- host glue: pad NCHW input, flatten spatial, append bias/zero channels ----
    xpad = jnp.pad(x_nchw, ((0, 0), (0, 0), (P, P), (P, P)))          # (N,Cin,Hp,Wp)
    xflat = xpad.reshape(N, Cin, Hp * Wp)
    xflat = jnp.pad(xflat, ((0, 0), (0, 0), (0, Lin_pad - Hp * Wp)))  # tail guard
    ones = jnp.ones((N, 1, Lin_pad), xflat.dtype)                     # bias channel
    zeros = jnp.zeros((N, Cin_pad - Cin - 1, Lin_pad), xflat.dtype)   # alignment pad
    xflat = jnp.concatenate([xflat, ones, zeros], axis=1).astype(compute_dtype)

    # ---- host glue: residue-decomposed weight matrix (tiny), bias folded in ----
    # W[(rh, rw, co), (j, i, ci)] = w_pt[ci, co, rh + j*s, rw + i*s]   (0 if OOB)
    # Column (j=0, i=0, ci=Cin) multiplies the all-ones channel -> carries the bias.
    wz = jnp.pad(w_pt.astype(jnp.float32),
                 ((0, Cin_pad - Cin), (0, 0), (0, Km * s - K), (0, Km * s - K)))
    w6 = wz.reshape(Cin_pad, Cout, Km, s, Km, s)        # (ci, co, j, rh, i, rw)
    w_all = jnp.transpose(w6, (3, 5, 1, 2, 4, 0)).reshape(R, Ctot)
    w_aug = w_all.at[:, Cin].set(jnp.tile(b.astype(jnp.float32), s * s))
    w_aug = w_aug.astype(compute_dtype)                 # (R, Ctot)

    def kernel(x_ref, w_ref, o_ref, p_ref):
        # x_ref: (NB, Cin_pad, Lin_pad)  padded, spatially-flattened NCHW input
        # w_ref: (R, Ctot)               residue weights (+ bias column)
        # o_ref: (R, NB*Lpad)            f32 sub-pixel outputs, lane-dense
        # p_ref: (Ctot, NB*Lpad)         scratch patch matrix (tap-major, channel-minor)
        for n in range(NB):                              # static python loops
            for j in range(Km):
                for i in range(Km):
                    off = (P - j) * Wp + (P - i)         # static flat tap shift
                    t = j * Km + i
                    # fully sublane- and lane-aligned store (no vst.msk)
                    p_ref[pl.ds(t * Cin_pad, Cin_pad), pl.ds(n * Lpad, Lpad)] = (
                        x_ref[n, :, off:off + Lpad])
        acc = jnp.dot(w_ref[...], p_ref[...], preferred_element_type=jnp.float32)
        o_ref[...] = jnp.where(acc >= 0, acc, 0.01 * acc).astype(o_ref.dtype)

    # NOTE(production sizes): add a second ("arbitrary") grid axis over lane tiles of
    # Lpad so that double-buffered x blocks + the (R, L_tile) output + the
    # (Ctot, L_tile) scratch stay under ~32 MiB default scoped VMEM; on v7x the
    # physical cap is 64 MiB, so roughly halve a lane tile tuned for v6e, or raise
    # vmem_limit_bytes with headroom.
    out_flat = pl.pallas_call(
        kernel,
        out_shape=jax.ShapeDtypeStruct((R, N * Lpad), jnp.float32),
        grid=(T,),
        in_specs=[
            pl.BlockSpec((NB, Cin_pad, Lin_pad), lambda t: (t, 0, 0)),
            pl.BlockSpec((R, Ctot), lambda t: (0, 0)),
        ],
        out_specs=pl.BlockSpec((R, NB * Lpad), lambda t: (0, t)),
        scratch_shapes=[pltpu.VMEM((Ctot, NB * Lpad), compute_dtype)],
        compiler_params=pltpu.CompilerParams(dimension_semantics=("parallel",)),
    )(xflat, w_aug)

    # ---- host glue: interleave the s*s residue grids -> NCHW, crop padding ----
    out = out_flat.reshape(R, N, Lpad)[:, :, :L]
    out = out.reshape(s, s, Cout, N, Qh, Wp)[..., :Qw]   # drop wrapped columns
    out = jnp.transpose(out, (3, 2, 4, 0, 5, 1))         # (N, Cout, Qh, s, Qw, s)
    out = out.reshape(N, Cout, Qh * s, Qw * s)[:, :, :Hout, :Wout]
    return out


def _reference_numpy(x_nchw, w_pt, b, stride):
    """Independent scatter-formulation reference of ConvTranspose2d + LeakyReLU."""
    x = np.asarray(x_nchw, np.float32)
    w = np.asarray(w_pt, np.float32)
    bb = np.asarray(b, np.float32)
    N, Cin, H, W = x.shape
    _, Cout, K, _ = w.shape
    s = stride
    Hout = (H - 1) * s + K
    Wout = (W - 1) * s + K
    out = np.zeros((N, Cout, Hout, Wout), np.float32)
    for kh in range(K):
        for kw in range(K):
            contrib = np.einsum('nchw,cd->ndhw', x, w[:, :, kh, kw])
            out[:, :, kh:kh + (H - 1) * s + 1:s,
                kw:kw + (W - 1) * s + 1:s] += contrib
    out += bb[None, :, None, None]
    return np.where(out >= 0, out, 0.01 * out)


if __name__ == "__main__":
    # Module config: ConvTranspBlock(in_channels=4, out_channels=8,
    #                                kernel_size=3, stride=2)
    N, Cin, H, W = 2, 4, 16, 16
    Cout, K, stride = 8, 3, 2

    key = jax.random.PRNGKey(0)
    kx, kw, kb = jax.random.split(key, 3)
    x = jax.random.normal(kx, (N, Cin, H, W), jnp.float32)
    # Deterministic synthetic parameters (shapes match nn.ConvTranspose2d).
    w_pt = jax.random.normal(kw, (Cin, Cout, K, K), jnp.float32) * 0.1
    bias = jax.random.normal(kb, (Cout,), jnp.float32) * 0.1

    ref = _reference_numpy(x, w_pt, bias, stride)

    # f32 MXU path: strict check against the scatter reference.
    fwd_f32 = jax.jit(functools.partial(conv_transp_block, stride=stride,
                                        compute_dtype=jnp.float32))
    out_f32 = jax.block_until_ready(fwd_f32(x, w_pt, bias))
    assert out_f32.shape == ref.shape, (out_f32.shape, ref.shape)
    np.testing.assert_allclose(np.asarray(out_f32), ref, rtol=1e-4, atol=1e-4)

    # bf16 MXU path (default, per v6e/v7x guidance): compare against a reference
    # whose inputs were rounded to bf16, so only accumulation order differs.
    fwd_bf16 = jax.jit(functools.partial(conv_transp_block, stride=stride,
                                         compute_dtype=jnp.bfloat16))
    out_bf16 = jax.block_until_ready(fwd_bf16(x, w_pt, bias))
    cast = lambda a: np.asarray(jnp.asarray(a, jnp.bfloat16).astype(jnp.float32))
    ref_bf16 = _reference_numpy(cast(x), cast(w_pt), cast(bias), stride)
    assert out_bf16.shape == ref_bf16.shape, (out_bf16.shape, ref_bf16.shape)
    np.testing.assert_allclose(np.asarray(out_bf16), ref_bf16, rtol=1e-3, atol=1e-3)

    print("KERNEL_OK")
</pallas_src>

<mosaic_0001>
module attributes {stable_mosaic.version = 11 : i64} {
  func.func @kernel(%arg0: i32, %arg1: memref<2x8x512xf32, #tpu.memory_space<vmem>>, %arg2: memref<32x32xf32, #tpu.memory_space<vmem>>, %arg3: memref<32x768xf32, #tpu.memory_space<vmem>>, %arg4: memref<32x768xf32, #tpu.memory_space<vmem>>) attributes {dimension_semantics = [#tpu.dimension_semantics<parallel>], iteration_bounds = array<i64: 1>, scalar_prefetch = 0 : i64, scratch_operands = 1 : i64, tpu.core_type = #tpu.core_type<tc>, window_params = [{transform_indices = @transform_0, window_bounds = array<i64: 2, 8, 512>}, {pipeline_mode = #tpu.pipeline_mode<synchronous>, transform_indices = @transform_1, window_bounds = array<i64: 32, 32>}, {transform_indices = @transform_2, window_bounds = array<i64: 32, 768>}]} {
    %c0 = arith.constant 0 : index
    %c0_0 = arith.constant 0 : index
    %c19 = arith.constant 19 : index
    %0 = vector.load %arg1[%c0, %c0_0, %c19] : memref<2x8x512xf32, #tpu.memory_space<vmem>>, vector<1x8x384xf32>
    %1 = vector.shape_cast %0 : vector<1x8x384xf32> to vector<8x384xf32>
    %c0_1 = arith.constant 0 : index
    %c0_2 = arith.constant 0 : index
    %2 = vector.load %arg4[%c0_1, %c0_2] : memref<32x768xf32, #tpu.memory_space<vmem>>, vector<8x384xf32>
    tpu.vector_store %arg4[%c0_1, %c0_2], %1 {strides = array<i32>} : memref<32x768xf32, #tpu.memory_space<vmem>>, vector<8x384xf32>,
    %c0_3 = arith.constant 0 : index
    %c0_4 = arith.constant 0 : index
    %c18 = arith.constant 18 : index
    %3 = vector.load %arg1[%c0_3, %c0_4, %c18] : memref<2x8x512xf32, #tpu.memory_space<vmem>>, vector<1x8x384xf32>
    %4 = vector.shape_cast %3 : vector<1x8x384xf32> to vector<8x384xf32>
    %c8 = arith.constant 8 : index
    %c0_5 = arith.constant 0 : index
    %5 = vector.load %arg4[%c8, %c0_5] : memref<32x768xf32, #tpu.memory_space<vmem>>, vector<8x384xf32>
    tpu.vector_store %arg4[%c8, %c0_5], %4 {strides = array<i32>} : memref<32x768xf32, #tpu.memory_space<vmem>>, vector<8x384xf32>,
    %c0_6 = arith.constant 0 : index
    %c0_7 = arith.constant 0 : index
    %c1 = arith.constant 1 : index
    %6 = vector.load %arg1[%c0_6, %c0_7, %c1] : memref<2x8x512xf32, #tpu.memory_space<vmem>>, vector<1x8x384xf32>
    %7 = vector.shape_cast %6 : vector<1x8x384xf32> to vector<8x384xf32>
    %c16 = arith.constant 16 : index
    %c0_8 = arith.constant 0 : index
    %8 = vector.load %arg4[%c16, %c0_8] : memref<32x768xf32, #tpu.memory_space<vmem>>, vector<8x384xf32>
    tpu.vector_store %arg4[%c16, %c0_8], %7 {strides = array<i32>} : memref<32x768xf32, #tpu.memory_space<vmem>>, vector<8x384xf32>,
    %c0_9 = arith.constant 0 : index
    %c0_10 = arith.constant 0 : index
    %c0_11 = arith.constant 0 : index
    %9 = vector.load %arg1[%c0_9, %c0_10, %c0_11] : memref<2x8x512xf32, #tpu.memory_space<vmem>>, vector<1x8x384xf32>
    %10 = vector.shape_cast %9 : vector<1x8x384xf32> to vector<8x384xf32>
    %c24 = arith.constant 24 : index
    %c0_12 = arith.constant 0 : index
    %11 = vector.load %arg4[%c24, %c0_12] : memref<32x768xf32, #tpu.memory_space<vmem>>, vector<8x384xf32>
    tpu.vector_store %arg4[%c24, %c0_12], %10 {strides = array<i32>} : memref<32x768xf32, #tpu.memory_space<vmem>>, vector<8x384xf32>,
    %c1_13 = arith.constant 1 : index
    %c0_14 = arith.constant 0 : index
    %c19_15 = arith.constant 19 : index
    %12 = vector.load %arg1[%c1_13, %c0_14, %c19_15] : memref<2x8x512xf32, #tpu.memory_space<vmem>>, vector<1x8x384xf32>
    %13 = vector.shape_cast %12 : vector<1x8x384xf32> to vector<8x384xf32>
    %c0_16 = arith.constant 0 : index
    %c384 = arith.constant 384 : index
    %14 = vector.load %arg4[%c0_16, %c384] : memref<32x768xf32, #tpu.memory_space<vmem>>, vector<8x384xf32>
    tpu.vector_store %arg4[%c0_16, %c384], %13 {strides = array<i32>} : memref<32x768xf32, #tpu.memory_space<vmem>>, vector<8x384xf32>,
    %c1_17 = arith.constant 1 : index
    %c0_18 = arith.constant 0 : index
    %c18_19 = arith.constant 18 : index
    %15 = vector.load %arg1[%c1_17, %c0_18, %c18_19] : memref<2x8x512xf32, #tpu.memory_space<vmem>>, vector<1x8x384xf32>
    %16 = vector.shape_cast %15 : vector<1x8x384xf32> to vector<8x384xf32>
    %c8_20 = arith.constant 8 : index
    %c384_21 = arith.constant 384 : index
    %17 = vector.load %arg4[%c8_20, %c384_21] : memref<32x768xf32, #tpu.memory_space<vmem>>, vector<8x384xf32>
    tpu.vector_store %arg4[%c8_20, %c384_21], %16 {strides = array<i32>} : memref<32x768xf32, #tpu.memory_space<vmem>>, vector<8x384xf32>,
    %c1_22 = arith.constant 1 : index
    %c0_23 = arith.constant 0 : index
    %c1_24 = arith.constant 1 : index
    %18 = vector.load %arg1[%c1_22, %c0_23, %c1_24] : memref<2x8x512xf32, #tpu.memory_space<vmem>>, vector<1x8x384xf32>
    %19 = vector.shape_cast %18 : vector<1x8x384xf32> to vector<8x384xf32>
    %c16_25 = arith.constant 16 : index
    %c384_26 = arith.constant 384 : index
    %20 = vector.load %arg4[%c16_25, %c384_26] : memref<32x768xf32, #tpu.memory_space<vmem>>, vector<8x384xf32>
    tpu.vector_store %arg4[%c16_25, %c384_26], %19 {strides = array<i32>} : memref<32x768xf32, #tpu.memory_space<vmem>>, vector<8x384xf32>,
    %c1_27 = arith.constant 1 : index
    %c0_28 = arith.constant 0 : index
    %c0_29 = arith.constant 0 : index
    %21 = vector.load %arg1[%c1_27, %c0_28, %c0_29] : memref<2x8x512xf32, #tpu.memory_space<vmem>>, vector<1x8x384xf32>
    %22 = vector.shape_cast %21 : vector<1x8x384xf32> to vector<8x384xf32>
    %c24_30 = arith.constant 24 : index
    %c384_31 = arith.constant 384 : index
    %23 = vector.load %arg4[%c24_30, %c384_31] : memref<32x768xf32, #tpu.memory_space<vmem>>, vector<8x384xf32>
    tpu.vector_store %arg4[%c24_30, %c384_31], %22 {strides = array<i32>} : memref<32x768xf32, #tpu.memory_space<vmem>>, vector<8x384xf32>,
    %c0_32 = arith.constant 0 : index
    %c0_33 = arith.constant 0 : index
    %24 = vector.load %arg2[%c0_32, %c0_33] : memref<32x32xf32, #tpu.memory_space<vmem>>, vector<32x32xf32>
    %c0_34 = arith.constant 0 : index
    %c0_35 = arith.constant 0 : index
    %25 = vector.load %arg4[%c0_34, %c0_35] : memref<32x768xf32, #tpu.memory_space<vmem>>, vector<32x768xf32>
    %cst = arith.constant dense<0.000000e+00> : vector<32x768xf32>
    %26 = tpu.matmul %24, %25, %cst {dimension_numbers = #tpu.dot_dimension_numbers<[1], [0], [0], [1], [0, 0, 1, 1], [], []>} : vector<32x32xf32>, vector<32x768xf32>, vector<32x768xf32> -> vector<32x768xf32>
    %cst_36 = arith.constant 0.000000e+00 : f32
    %27 = vector.broadcast %cst_36 : f32 to vector<32x768xf32>
    %28 = arith.cmpf oge, %26, %27 : vector<32x768xf32>
    %cst_37 = arith.constant 0.00999999977 : f32
    %29 = vector.broadcast %cst_37 : f32 to vector<32x768xf32>
    %30 = arith.mulf %29, %26 : vector<32x768xf32>
    %31 = arith.select %28, %26, %30 : vector<32x768xi1>, vector<32x768xf32>
    %c0_38 = arith.constant 0 : index
    %c0_39 = arith.constant 0 : index
    %32 = vector.load %arg3[%c0_38, %c0_39] : memref<32x768xf32, #tpu.memory_space<vmem>>, vector<32x768xf32>
    tpu.vector_store %arg3[%c0_38, %c0_39], %31 {strides = array<i32>} : memref<32x768xf32, #tpu.memory_space<vmem>>, vector<32x768xf32>,
    return
  }
  func.func @transform_0(%arg0: i32) -> (i32, i32, i32) {
    %c0_i32 = arith.constant 0 : i32
    %c0_i32_0 = arith.constant 0 : i32
    %c0_i32_1 = arith.constant 0 : i32
    return %arg0, %c0_i32, %c0_i32_0 : i32, i32, i32
  }
  func.func @transform_1(%arg0: i32) -> (i32, i32) {
    %c0_i32 = arith.constant 0 : i32
    %c0_i32_0 = arith.constant 0 : i32
    %c0_i32_1 = arith.constant 0 : i32
    return %c0_i32, %c0_i32_0 : i32, i32
  }
  func.func @transform_2(%arg0: i32) -> (i32, i32) {
    %c0_i32 = arith.constant 0 : i32
    %c0_i32_0 = arith.constant 0 : i32
    return %c0_i32, %arg0 : i32, i32
  }
}

</mosaic_0001>

<bundles_post_ra>
// kernel: tile.8
= control target key start
LH: loop header
LB: loop body
LE: loop exit
PB: predicated region body
PF: predicated region fallthrough
CT: control target
= control target key end

     0   :  { %2 = vsyncpa [#allocation1], 0  ;;  %s42_s6 = smov [#allocation0]   ;;  %s59_s0 = inlined_call_operand.hbm [shape: f32[8], index: 0, kind: input, shape index: {}]   ;;  %s60_s1 = inlined_call_operand.vmem [shape: f32[4,8], index: 1, kind: output, shape index: {}]  }
   0x1   :  { %s9_s7 = sshll.u32 %s42_s6, 4  ;;  %s10_s7 = int_to_ptr.vmem [resolvable:$true] %s9_s7 }
   0x2   :  { %s28_s8 = scalar_lea.vmem %s10_s7, 16  ;;  %s32_s9 = scalar_lea.vmem %s10_s7, 32 }
   0x3   :  { %p29_p0 = scmp.ne.s32.totalorder %s10_s7, %s28_s8  ;;  %p33_p1 = scmp.lt.s32.totalorder %s10_s7, %s10_s7 }
   0x4   :  { %p34_p2 = scmp.lt.s32.totalorder %s32_s9, %s28_s8 }
   0x6   :  { %p35_p3 = por %p34_p2, %p33_p1 }
   0x8   :  { %p36_p4 = pnand %p35_p3, %p29_p0 }
   0xa   :  { %39 = shalt.err (!%p36_p4)
}
   0xb   :  { %12 = dma.hbm_to_vmem [thread:$0]  %s59_s0, 16, %s10_s7, [#allocation1]  }
   0xc   :  { %40 = dma.done.wait [#allocation1], 16  }
   0xd   :  { %41 = vsyncadd [#allocation1], 4294967280  ;;  %v16_v0 = vld [vmem:[#allocation0] ss:$0 sm:$0xff] }
   0xe   :  { %17 = vst [vmem:[%s60_s1] sm:$0xf] %v16_v0 }
   0xf   :  { %18 = vsyncpa [#allocation1], 1 }

// kernel: conv_transp_block.1
= control target key start
LH: loop header
LB: loop body
LE: loop exit
PB: predicated region body
PF: predicated region fallthrough
CT: control target
= control target key end

     0   :  { %s624_s13 = smov 127   ;;  %s625_s16 = smov 110   ;;  %v626_v3 = vmov 0.0   ;;  %vm79_vm0 = vcmask 1039360   ;;  %vm53_vm1 = vcmask 900096   ;;  %vm27_vm2 = vcmask 891904   ;;  %s804_s0 = inlined_call_operand.vmem [shape: f32[2,8,512], index: 0, kind: input, shape index: {}]   ;;  %s805_s1 = inlined_call_operand.vmem [shape: f32[32,32], index: 1, kind: input, shape index: {}]   ;;  %s806_s2 = inlined_call_operand.vmem [shape: f32[32,768], index: 2, kind: output, shape index: {}]  }
   0x1   :  { %v64_v0 = vld [vmem:[%s804_s0 + $0x8] sm:$0xff]  ;;  %v63_v1 = vld [vmem:[%s804_s0] sm:$0xff]  ;;  %v652_v2 = vld [vmem:[%s804_s0 + $0x10] sm:$0xff]  ;;  %294 = vmatprep.mubr.f32.mxu1 %v626_v3  ;;  %282 = vmatprep.mubr.f32.mxu0 %v626_v3  ;;  %s627_s17 = smov 109   ;;  %vm205_vm3 = vcmask 261120  }
   0x2   :  { %73 = vrot.lane.b32.xlu0 %v64_v0, %s624_s13  ;;  %71 = vrot.lane.b32.xlu1 %v63_v1, %s624_s13  ;;  %v593_v4 = vld [vmem:[%s804_s0 + $0x20] sm:$0xff]  ;;  %v595_v5 = vld [vmem:[%s804_s0 + $0x30] sm:$0xff] }
   0x3   :  { %242 = vmatprep.subr.mxu0 %v64_v0  ;;  %612 = vmatprep.subr.mxu1 %v64_v0  ;;  %v594_v6 = vld [vmem:[%s804_s0 + $0x28] sm:$0xff]  ;;  %v66_v7 = vld [vmem:[%s804_s0 + $0x18] sm:$0xff]  ;;  %v682_v24 = vld [vmem:[%s805_s1 + $0x10] sm:$0xff] }
   0x4   :  { %243 = vmatpush1.msra.mxu0 %v63_v1  ;;  %616 = vmatpush1.msra.mxu1 %v63_v1  ;;  %v596_v8 = vld [vmem:[%s804_s0 + $0x38] sm:$0xff]  ;;  %v177_v26 = vld [vmem:[%s805_s1] sm:$0xff]  ;;  %v178_v31 = vld [vmem:[%s805_s1 + $0x8] sm:$0xff] }
   0x5   :  { %v180_v29 = vld [vmem:[%s805_s1 + $0x18] sm:$0xff] }
   0x6   :  { %75 = vrot.lane.b32.xlu0 %v652_v2, %s624_s13  ;;  %47 = vrot.lane.b32.xlu1 %v64_v0, %s625_s16 }
   0xa   :  { %49 = vrot.lane.b32.xlu0 %v652_v2, %s625_s16  ;;  %45 = vrot.lane.b32.xlu1 %v63_v1, %s625_s16 }
   0xe   :  { %23 = vrot.lane.b32.xlu1 %v652_v2, %s627_s17  ;;  %21 = vrot.lane.b32.xlu0 %v64_v0, %s627_s17 }
  0x12   :  { %154 = vrot.lane.b32.xlu1 %v593_v4, %s624_s13  ;;  %19 = vrot.lane.b32.xlu0 %v63_v1, %s627_s17 }
  0x16   :  { %158 = vrot.lane.b32.xlu1 %v595_v5, %s624_s13  ;;  %156 = vrot.lane.b32.xlu0 %v594_v6, %s624_s13 }
  0x1a   :  { %77 = vrot.lane.b32.xlu1 %v66_v7, %s624_s13  ;;  %160 = vrot.lane.b32.xlu0 %v596_v8, %s624_s13 }
  0x1e   :  { %131 = vrot.lane.b32.xlu1 %v594_v6, %s625_s16  ;;  %129 = vrot.lane.b32.xlu0 %v593_v4, %s625_s16 }
  0x22   :  { %135 = vrot.lane.b32.xlu1 %v596_v8, %s625_s16  ;;  %133 = vrot.lane.b32.xlu0 %v595_v5, %s625_s16 }
  0x26   :  { %104 = vrot.lane.b32.xlu1 %v593_v4, %s627_s17  ;;  %51 = vrot.lane.b32.xlu0 %v66_v7, %s625_s16 }
  0x2a   :  { %108 = vrot.lane.b32.xlu1 %v595_v5, %s627_s17  ;;  %106 = vrot.lane.b32.xlu0 %v594_v6, %s627_s17 }
  0x2e   :  { %25 = vrot.lane.b32.xlu1 %v66_v7, %s627_s17  ;;  %110 = vrot.lane.b32.xlu0 %v596_v8, %s627_s17 }
  0x74   :  { %v74_v9 = vpop.permute.xlu0 %73  ;;  %v72_v10 = vpop.permute.xlu1 %71 }
  0x75   :  { %v80_v14 = vsel %vm79_vm0, %v72_v10, %v74_v9 }
  0x78   :  { %v76_v11 = vpop.permute.xlu0 %75  ;;  %v48_v12 = vpop.permute.xlu1 %47 }
  0x79   :  { %v81_v13 = vsel %vm79_vm0, %v74_v9, %v76_v11 }
  0x7a   :  { %244 = vmatprep.subr.mxu0 %v81_v13  ;;  %613 = vmatprep.subr.mxu1 %v81_v13 }
  0x7b   :  { %245 = vmatpush1.msra.mxu0 %v80_v14  ;;  %617 = vmatpush1.msra.mxu1 %v80_v14 }
  0x7c   :  { %v50_v15 = vpop.permute.xlu0 %49  ;;  %v46_v16 = vpop.permute.xlu1 %45 }
  0x7d   :  { %v55_v17 = vsel %vm53_vm1, %v48_v12, %v50_v15  ;;  %v54_v18 = vsel %vm53_vm1, %v46_v16, %v48_v12 }
  0x7e   :  { %246 = vmatprep.subr.mxu0 %v55_v17  ;;  %614 = vmatprep.subr.mxu1 %v55_v17 }
  0x7f   :  { %247 = vmatpush1.msra.mxu0 %v54_v18  ;;  %618 = vmatpush1.msra.mxu1 %v54_v18 }
  0x80   :  { %v24_v19 = vpop.permute.xlu1 %23  ;;  %v22_v20 = vpop.permute.xlu0 %21 }
  0x81   :  { %v29_v21 = vsel %vm27_vm2, %v22_v20, %v24_v19 }
  0x82   :  { %248 = vmatprep.subr.mxu0 %v29_v21  ;;  %615 = vmatprep.subr.mxu1 %v29_v21 }
  0x84   :  { %v155_v22 = vpop.permute.xlu1 %154  ;;  %v20_v23 = vpop.permute.xlu0 %19 }
  0x85   :  { %v28_v25 = vsel %vm27_vm2, %v20_v23, %v22_v20 }
  0x86   :  { %249 = vmatpush1.msra.mxu0 %v28_v25  ;;  %619 = vmatpush1.msra.mxu1 %v28_v25 }
  0x87   :  { %331 = vmatprep.subr.mxu1 %v593_v4  ;;  %602 = vmatmul.mubr.msk.f32.vlgmr.msra.gmra.mxu1 %vm205_vm3, %v682_v24 }
  0x88   :  { %v159_v27 = vpop.permute.xlu1 %158  ;;  %v157_v28 = vpop.permute.xlu0 %156  ;;  %332 = vmatpush1.msra.mxu1 %v652_v2  ;;  %420 = vmatprep.subr.mxu0 %v595_v5 }
  0x89   :  { %v162_v30 = vsel %vm79_vm0, %v155_v22, %v157_v28  ;;  %600 = vmatmul.mubr.msk.f32.vlgmr.msra.gmra.mxu0 %vm205_vm3, %v177_v26  ;;  %300 = vmatprep.mubr.f32.mxu1 %v626_v3  ;;  %v163_v36 = vsel %vm79_vm0, %v157_v28, %v159_v27 }
  0x8a   :  { %333 = vmatprep.subr.mxu1 %v162_v30  ;;  %421 = vmatpush1.msra.mxu0 %v594_v6 }
  0x8b   :  { %288 = vmatprep.mubr.f32.mxu0 %v626_v3  ;;  %603 = vmatmul.mubr.msk.f32.gmra.mxu1 %vm205_vm3, %v180_v29 }
  0x8c   :  { %v78_v32 = vpop.permute.xlu1 %77  ;;  %v161_v33 = vpop.permute.xlu0 %160  ;;  %371 = vmatprep.mubr.f32.mxu1 %v626_v3 }
  0x8d   :  { %v82_v34 = vsel %vm79_vm0, %v76_v11, %v78_v32  ;;  %v164_v35 = vsel %vm79_vm0, %v159_v27, %v161_v33  ;;  %601 = vmatmul.mubr.msk.f32.gmra.mxu0 %vm205_vm3, %v178_v31 }
  0x8e   :  { %334 = vmatpush1.msra.mxu1 %v82_v34  ;;  %422 = vmatprep.subr.mxu0 %v164_v35 }
  0x8f   :  { %423 = vmatpush1.msra.mxu0 %v163_v36  ;;  %460 = vmatprep.mubr.f32.mxu0 %v626_v3 }
  0x90   :  { %v132_v37 = vpop.permute.xlu1 %131  ;;  %v130_v38 = vpop.permute.xlu0 %129 }
  0x91   :  { %v137_v39 = vsel %vm53_vm1, %v130_v38, %v132_v37 }
  0x92   :  { %335 = vmatprep.subr.mxu1 %v137_v39 }
  0x94   :  { %v136_v40 = vpop.permute.xlu1 %135  ;;  %v134_v41 = vpop.permute.xlu0 %133 }
  0x95   :  { %v138_v42 = vsel %vm53_vm1, %v132_v37, %v134_v41  ;;  %v139_v43 = vsel %vm53_vm1, %v134_v41, %v136_v40 }
  0x96   :  { %424 = vmatprep.subr.mxu0 %v139_v43 }
  0x97   :  { %425 = vmatpush1.msra.mxu0 %v138_v42 }
  0x98   :  { %v105_v44 = vpop.permute.xlu1 %104  ;;  %v52_v45 = vpop.permute.xlu0 %51 }
  0x99   :  { %v56_v46 = vsel %vm53_vm1, %v50_v15, %v52_v45 }
  0x9a   :  { %336 = vmatpush1.msra.mxu1 %v56_v46 }
  0x9c   :  { %v109_v47 = vpop.permute.xlu1 %108  ;;  %v107_v48 = vpop.permute.xlu0 %106 }
  0x9d   :  { %v112_v49 = vsel %vm27_vm2, %v105_v44, %v107_v48  ;;  %v113_v54 = vsel %vm27_vm2, %v107_v48, %v109_v47 }
  0x9e   :  { %337 = vmatprep.subr.mxu1 %v112_v49 }
  0xa0   :  { %v26_v50 = vpop.permute.xlu1 %25  ;;  %v111_v51 = vpop.permute.xlu0 %110 }
  0xa1   :  { %v30_v52 = vsel %vm27_vm2, %v24_v19, %v26_v50  ;;  %v114_v53 = vsel %vm27_vm2, %v109_v47, %v111_v51 }
  0xa2   :  { %338 = vmatpush1.msra.mxu1 %v30_v52  ;;  %426 = vmatprep.subr.mxu0 %v114_v53 }
  0xa3   :  { %604 = vmatmul.mubr.msk.f32.vlgmr.msra.gmra.mxu1 %vm205_vm3, %v177_v26  ;;  %427 = vmatpush1.msra.mxu0 %v113_v54 }
  0xa4   :  { %608 = vmatmul.mubr.msk.f32.vlgmr.msra.gmra.mxu0 %vm205_vm3, %v177_v26  ;;  %377 = vmatprep.mubr.f32.mxu1 %v626_v3 }
  0xa5   :  { %466 = vmatprep.mubr.f32.mxu0 %v626_v3 }
  0xa7   :  { %605 = vmatmul.mubr.msk.f32.gmra.mxu1 %vm205_vm3, %v178_v31 }
  0xa8   :  { %609 = vmatmul.mubr.msk.f32.gmra.mxu0 %vm205_vm3, %v178_v31  ;;  %383 = vmatprep.mubr.f32.mxu1 %v626_v3 }
  0xa9   :  { %472 = vmatprep.mubr.f32.mxu0 %v626_v3 }
  0xab   :  { %606 = vmatmul.mubr.msk.f32.gmra.mxu1 %vm205_vm3, %v682_v24 }
  0xac   :  { %610 = vmatmul.mubr.msk.f32.gmra.mxu0 %vm205_vm3, %v682_v24  ;;  %389 = vmatprep.mubr.f32.mxu1 %v626_v3 }
  0xad   :  { %478 = vmatprep.mubr.f32.mxu0 %v626_v3 }
  0xaf   :  { %607 = vmatmul.mubr.msk.f32.gmra.mxu1 %vm205_vm3, %v180_v29 }
  0xb0   :  { %611 = vmatmul.mubr.msk.f32.gmra.mxu0 %vm205_vm3, %v180_v29 }
 0x147   :  { %v296_v55 = vpop.f32.mrf.mxu1 }
 0x148   :  { %vm497_vm4 = vcmp.ge.f32.partialorder %v296_v55, 0.0  ;;  %v521_v56 = vmul.f32 0.01, %v296_v55 }
 0x149   :  { %v284_v57 = vpop.f32.mrf.mxu0  ;;  %v298_v58 = vpop.f32.mrf.mxu1 }
 0x14a   :  { %vm485_vm5 = vcmp.ge.f32.partialorder %v284_v57, 0.0  ;;  %v509_v59 = vmul.f32 0.01, %v284_v57  ;;  %v545_v60 = vsel %vm497_vm4, %v296_v55, %v521_v56  ;;  %vm498_vm6 = vcmp.ge.f32.partialorder %v298_v58, 0.0 }
 0x14b   :  { %569 = vst [vmem:[%s806_s2 + $0x60] sm:$0xff] %v545_v60  ;;  %v286_v61 = vpop.f32.mrf.mxu0  ;;  %v522_v62 = vmul.f32 0.01, %v298_v58  ;;  %v302_v63 = vpop.f32.mrf.mxu1 }
 0x14c   :  { %v533_v0 = vsel %vm485_vm5, %v284_v57, %v509_v59  ;;  %vm486_vm7 = vcmp.ge.f32.partialorder %v286_v61, 0.0  ;;  %v510_v1 = vmul.f32 0.01, %v286_v61  ;;  %vm503_vm8 = vcmp.ge.f32.partialorder %v302_v63, 0.0 }
 0x14d   :  { %557 = vst [vmem:[%s806_s2] sm:$0xff] %v533_v0  ;;  %v546_v2 = vsel %vm498_vm6, %v298_v58, %v522_v62  ;;  %v290_v3 = vpop.f32.mrf.mxu0  ;;  %v527_v4 = vmul.f32 0.01, %v302_v63  ;;  %v304_v5 = vpop.f32.mrf.mxu1 }
 0x14e   :  { %v534_v6 = vsel %vm486_vm7, %v286_v61, %v510_v1  ;;  %570 = vst [vmem:[%s806_s2 + $0x68] sm:$0xff] %v546_v2  ;;  %vm491_vm9 = vcmp.ge.f32.partialorder %v290_v3, 0.0  ;;  %v515_v7 = vmul.f32 0.01, %v290_v3  ;;  %vm504_vm10 = vcmp.ge.f32.partialorder %v304_v5, 0.0 }
 0x14f   :  { %558 = vst [vmem:[%s806_s2 + $0x8] sm:$0xff] %v534_v6  ;;  %v551_v8 = vsel %vm503_vm8, %v302_v63, %v527_v4  ;;  %v292_v9 = vpop.f32.mrf.mxu0  ;;  %v528_v10 = vmul.f32 0.01, %v304_v5 }
 0x150   :  { %v539_v11 = vsel %vm491_vm9, %v290_v3, %v515_v7  ;;  %575 = vst [vmem:[%s806_s2 + $0x90] sm:$0xff] %v551_v8  ;;  %vm492_vm11 = vcmp.ge.f32.partialorder %v292_v9, 0.0  ;;  %v516_v12 = vmul.f32 0.01, %v292_v9 }
 0x151   :  { %563 = vst [vmem:[%s806_s2 + $0x30] sm:$0xff] %v539_v11  ;;  %v552_v13 = vsel %vm504_vm10, %v304_v5, %v528_v10 }
 0x152   :  { %v540_v14 = vsel %vm492_vm11, %v292_v9, %v516_v12  ;;  %576 = vst [vmem:[%s806_s2 + $0x98] sm:$0xff] %v552_v13 }
 0x153   :  { %564 = vst [vmem:[%s806_s2 + $0x38] sm:$0xff] %v540_v14 }
 0x163   :  { %v373_v15 = vpop.f32.mrf.mxu1 }
 0x164   :  { %vm487_vm12 = vcmp.ge.f32.partialorder %v373_v15, 0.0  ;;  %v511_v16 = vmul.f32 0.01, %v373_v15  ;;  %v462_v17 = vpop.f32.mrf.mxu0 }
 0x165   :  { %vm489_vm13 = vcmp.ge.f32.partialorder %v462_v17, 0.0  ;;  %v513_v18 = vmul.f32 0.01, %v462_v17  ;;  %v375_v19 = vpop.f32.mrf.mxu1 }
 0x166   :  { %v535_v20 = vsel %vm487_vm12, %v373_v15, %v511_v16  ;;  %vm488_vm14 = vcmp.ge.f32.partialorder %v375_v19, 0.0  ;;  %v512_v21 = vmul.f32 0.01, %v375_v19  ;;  %v464_v22 = vpop.f32.mrf.mxu0 }
 0x167   :  { %559 = vst [vmem:[%s806_s2 + $0x10] sm:$0xff] %v535_v20  ;;  %v537_v23 = vsel %vm489_vm13, %v462_v17, %v513_v18  ;;  %vm490_vm15 = vcmp.ge.f32.partialorder %v464_v22, 0.0  ;;  %v514_v24 = vmul.f32 0.01, %v464_v22  ;;  %v379_v25 = vpop.f32.mrf.mxu1 }
 0x168   :  { %561 = vst [vmem:[%s806_s2 + $0x20] sm:$0xff] %v537_v23  ;;  %v536_v26 = vsel %vm488_vm14, %v375_v19, %v512_v21  ;;  %vm493_vm0 = vcmp.ge.f32.partialorder %v379_v25, 0.0  ;;  %v517_v27 = vmul.f32 0.01, %v379_v25  ;;  %v468_v28 = vpop.f32.mrf.mxu0 }
 0x169   :  { %560 = vst [vmem:[%s806_s2 + $0x18] sm:$0xff] %v536_v26  ;;  %v538_v29 = vsel %vm490_vm15, %v464_v22, %v514_v24  ;;  %vm495_vm1 = vcmp.ge.f32.partialorder %v468_v28, 0.0  ;;  %v519_v30 = vmul.f32 0.01, %v468_v28  ;;  %v381_v31 = vpop.f32.mrf.mxu1 }
 0x16a   :  { %562 = vst [vmem:[%s806_s2 + $0x28] sm:$0xff] %v538_v29  ;;  %v541_v32 = vsel %vm493_vm0, %v379_v25, %v517_v27  ;;  %vm494_vm2 = vcmp.ge.f32.partialorder %v381_v31, 0.0  ;;  %v518_v33 = vmul.f32 0.01, %v381_v31  ;;  %v470_v34 = vpop.f32.mrf.mxu0 }
 0x16b   :  { %565 = vst [vmem:[%s806_s2 + $0x40] sm:$0xff] %v541_v32  ;;  %v543_v35 = vsel %vm495_vm1, %v468_v28, %v519_v30  ;;  %vm496_vm3 = vcmp.ge.f32.partialorder %v470_v34, 0.0  ;;  %v520_v36 = vmul.f32 0.01, %v470_v34  ;;  %v385_v37 = vpop.f32.mrf.mxu1 }
 0x16c   :  { %567 = vst [vmem:[%s806_s2 + $0x50] sm:$0xff] %v543_v35  ;;  %v542_v38 = vsel %vm494_vm2, %v381_v31, %v518_v33  ;;  %vm499_vm4 = vcmp.ge.f32.partialorder %v385_v37, 0.0  ;;  %v523_v39 = vmul.f32 0.01, %v385_v37  ;;  %v474_v40 = vpop.f32.mrf.mxu0 }
 0x16d   :  { %566 = vst [vmem:[%s806_s2 + $0x48] sm:$0xff] %v542_v38  ;;  %v544_v41 = vsel %vm496_vm3, %v470_v34, %v520_v36  ;;  %vm501_vm5 = vcmp.ge.f32.partialorder %v474_v40, 0.0  ;;  %v525_v42 = vmul.f32 0.01, %v474_v40  ;;  %v387_v43 = vpop.f32.mrf.mxu1 }
 0x16e   :  { %568 = vst [vmem:[%s806_s2 + $0x58] sm:$0xff] %v544_v41  ;;  %v547_v44 = vsel %vm499_vm4, %v385_v37, %v523_v39  ;;  %vm500_vm6 = vcmp.ge.f32.partialorder %v387_v43, 0.0  ;;  %v524_v45 = vmul.f32 0.01, %v387_v43  ;;  %v476_v46 = vpop.f32.mrf.mxu0 }
 0x16f   :  { %571 = vst [vmem:[%s806_s2 + $0x70] sm:$0xff] %v547_v44  ;;  %v549_v47 = vsel %vm501_vm5, %v474_v40, %v525_v42  ;;  %vm502_vm7 = vcmp.ge.f32.partialorder %v476_v46, 0.0  ;;  %v526_v48 = vmul.f32 0.01, %v476_v46  ;;  %v391_v49 = vpop.f32.mrf.mxu1 }
 0x170   :  { %573 = vst [vmem:[%s806_s2 + $0x80] sm:$0xff] %v549_v47  ;;  %v548_v50 = vsel %vm500_vm6, %v387_v43, %v524_v45  ;;  %vm505_vm8 = vcmp.ge.f32.partialorder %v391_v49, 0.0  ;;  %v529_v51 = vmul.f32 0.01, %v391_v49  ;;  %v480_v52 = vpop.f32.mrf.mxu0 }
 0x171   :  { %572 = vst [vmem:[%s806_s2 + $0x78] sm:$0xff] %v548_v50  ;;  %v550_v53 = vsel %vm502_vm7, %v476_v46, %v526_v48  ;;  %vm507_vm9 = vcmp.ge.f32.partialorder %v480_v52, 0.0  ;;  %v531_v54 = vmul.f32 0.01, %v480_v52  ;;  %v393_v55 = vpop.f32.mrf.mxu1 }
 0x172   :  { %574 = vst [vmem:[%s806_s2 + $0x88] sm:$0xff] %v550_v53  ;;  %v553_v56 = vsel %vm505_vm8, %v391_v49, %v529_v51  ;;  %vm506_vm10 = vcmp.ge.f32.partialorder %v393_v55, 0.0  ;;  %v530_v57 = vmul.f32 0.01, %v393_v55  ;;  %v482_v58 = vpop.f32.mrf.mxu0 }
 0x173   :  { %577 = vst [vmem:[%s806_s2 + $0xa0] sm:$0xff] %v553_v56  ;;  %v555_v59 = vsel %vm507_vm9, %v480_v52, %v531_v54  ;;  %vm508_vm11 = vcmp.ge.f32.partialorder %v482_v58, 0.0  ;;  %v532_v60 = vmul.f32 0.01, %v482_v58 }
 0x174   :  { %579 = vst [vmem:[%s806_s2 + $0xb0] sm:$0xff] %v555_v59  ;;  %v554_v61 = vsel %vm506_vm10, %v393_v55, %v530_v57 }
 0x175   :  { %578 = vst [vmem:[%s806_s2 + $0xa8] sm:$0xff] %v554_v61  ;;  %v556_v62 = vsel %vm508_vm11, %v482_v58, %v532_v60 }
 0x176   :  { %580 = vst [vmem:[%s806_s2 + $0xb8] sm:$0xff] %v556_v62 }

</bundles_post_ra>
